<compile_context>
chip_gen: v6e
topology: v6e:2x2x1
jax: 0.10.0
libtpu: 0.0.40
codegen_flags: <defaults>
</compile_context>

<pallas_src>
import math

import jax
import jax.numpy as jnp
from jax import lax
from jax.experimental import pallas as pl
from jax.experimental.pallas import tpu as pltpu

H1_PAD = 512   # 400 real units + 2*action_dim passthrough lanes, lane-padded
H2_PAD = 384   # 300 real units, lane-padded


def _critic_kernel(x_ref, w1_ref, b1_ref, w2_ref, b2_ref, w3_ref, b3_ref, q_ref):
    # Layer 1: relu( cat(state, action) @ W1 + b1 ).  bf16 MXU, f32 accumulate.
    # W1 also carries a ±identity block that forwards ±action into spare lanes.
    x = x_ref[...]                                                   # (tb, sd+ad) bf16
    h1 = jnp.maximum(
        jnp.dot(x, w1_ref[...], preferred_element_type=jnp.float32) + b1_ref[...],
        0.0)                                                         # (tb, H1) f32

    # Layer 2: the ±action passthrough lanes plus mirrored ±rows in W2 reproduce
    # relu( cat(h1, action) @ W2 + b2 ) with a single full-width matmul.
    h2 = jnp.maximum(
        jnp.dot(h1.astype(jnp.bfloat16), w2_ref[...],
                preferred_element_type=jnp.float32) + b2_ref[...],
        0.0)                                                         # (tb, H2) f32

    # Layer 3 (out_features == 1): contract H2 against the single weight row,
    # producing a lane-dense (1, tb) output row (no (tb, 1) masked stores).
    q_row = lax.dot_general(
        w3_ref[...], h2.astype(jnp.bfloat16),
        dimension_numbers=(((1,), (1,)), ((), ())),
        preferred_element_type=jnp.float32) + b3_ref[...]            # (1, tb)
    q_ref[...] = q_row


def critic_forward(state, action, params, *, block_b=1024, megacore_min_tile=256):
    B, sd = state.shape
    ad = action.shape[1]
    w1, b1, w2, b2, w3, b3 = params
    Din, H1 = w1.shape
    H2 = w2.shape[1]
    assert Din == sd + ad

    # Fold the concat once; bf16 activations feed the MXU natively (one DMA stream).
    x = jnp.concatenate([state, action], axis=1).astype(jnp.bfloat16)

    # Batch tile: large tiles amortize per-grid-step overhead; if the batch would
    # fit one tile but is big enough, split into two so both v7x TCs get work.
    if B > block_b:
        tb = block_b
    elif B >= 2 * megacore_min_tile:
        tb = ((B + 1) // 2 + 15) // 16 * 16          # 2 even-ish tiles, bf16-aligned
    else:
        tb = B                                       # single full-array tile
    grid_b = pl.cdiv(B, tb)

    def resident(arr):
        # Constant block index -> fetched once, stays resident in VMEM across tiles.
        return pl.BlockSpec(arr.shape, lambda i: (0, 0))

    flops = 2 * B * (Din * H1 + H1 * H2 + H2)        # padded dims; advisory only
    param_bytes = sum(int(p.size) * p.dtype.itemsize for p in params)
    bytes_accessed = param_bytes + x.size * x.dtype.itemsize + B * 4

    # TODO(synk): for a TD3 training loop, keep the ~0.4 MB of weights resident
    # across calls (cross-call prefetch / input_output_aliases) instead of
    # re-DMAing them every step.  If tb is pushed >= 4096, set vmem_limit_bytes
    # explicitly for v7x's smaller (64 MiB physical) VMEM.
    out = pl.pallas_call(
        _critic_kernel,
        out_shape=jax.ShapeDtypeStruct((grid_b, tb), jnp.float32),   # lane-dense rows
        grid=(grid_b,),
        in_specs=[
            pl.BlockSpec((tb, Din), lambda i: (i, 0)),
            resident(w1), resident(b1),
            resident(w2), resident(b2),
            resident(w3), resident(b3),
        ],
        out_specs=pl.BlockSpec((1, tb), lambda i: (i, 0)),
        compiler_params=pltpu.CompilerParams(
            dimension_semantics=("parallel",)),       # megacore batch sharding (v7x)
        cost_estimate=pl.CostEstimate(
            flops=flops, transcendentals=0, bytes_accessed=bytes_accessed),
    )(x, w1, b1, w2, b2, w3, b3)

    q = out.reshape(-1)[:B].reshape(B, 1)
    # forward() reuses linear1/2/3 for both heads, so x1 == x2 exactly.
    return q, q


def init_params(key, state_dim, action_dim, *, weight_dtype=jnp.bfloat16):
    """Init mirroring the PyTorch __init__ for linear1/2/3 (the only layers used
    by forward()).  Weight bounds follow the module's explicit (asymmetric)
    `.uniform_` calls; biases follow nn.Linear's default U(±1/sqrt(fan_in)).
    Weights are transposed to (in, out), zero-padded to lane-dense widths
    (400->512, 300->384), augmented with the ±action passthrough blocks, and
    stored in bf16 (biases stay f32)."""
    assert 400 + 2 * action_dim <= H1_PAD, "action_dim too large for padded width"
    ks = jax.random.split(key, 6)
    sd, ad = state_dim, action_dim
    in1 = sd + ad
    in2 = 400 + ad

    def u(k, shape, lo, hi):
        return jax.random.uniform(k, shape, jnp.float32, lo, hi)

    w1 = u(ks[0], (in1, 400), -1.0 / math.sqrt(in1), 1.0 / math.sqrt(sd))
    b1 = u(ks[1], (400,), -1.0 / math.sqrt(in1), 1.0 / math.sqrt(in1))
    w2 = u(ks[2], (in2, 300), -1.0 / math.sqrt(in2), 1.0 / math.sqrt(400))
    b2 = u(ks[3], (300,), -1.0 / math.sqrt(in2), 1.0 / math.sqrt(in2))
    w3 = u(ks[4], (300,), -0.003, 0.003)
    b3 = u(ks[5], (1,), -1.0 / math.sqrt(300), 1.0 / math.sqrt(300))

    eye = jnp.eye(ad, dtype=jnp.float32)

    # W1 augmented: columns [400, 400+ad) pass +action, [400+ad, 400+2ad) pass
    # -action, so ReLU keeps the positive/negative parts separately.
    w1p = jnp.zeros((in1, H1_PAD), jnp.float32)
    w1p = w1p.at[:, :400].set(w1)
    w1p = w1p.at[sd:sd + ad, 400:400 + ad].set(eye)
    w1p = w1p.at[sd:sd + ad, 400 + ad:400 + 2 * ad].set(-eye)
    b1p = jnp.zeros((1, H1_PAD), jnp.float32).at[0, :400].set(b1)

    # W2 augmented: rows for +action carry +w2a, rows for -action carry -w2a,
    # so relu(a)·w + relu(-a)·(-w) == a·w for any sign of a.
    w2p = jnp.zeros((H1_PAD, H2_PAD), jnp.float32)
    w2p = w2p.at[:400, :300].set(w2[:400])
    w2p = w2p.at[400:400 + ad, :300].set(w2[400:])
    w2p = w2p.at[400 + ad:400 + 2 * ad, :300].set(-w2[400:])
    b2p = jnp.zeros((1, H2_PAD), jnp.float32).at[0, :300].set(b2)

    w3p = jnp.zeros((1, H2_PAD), jnp.float32).at[0, :300].set(w3)
    b3p = b3.reshape(1, 1)

    wd = weight_dtype
    return (w1p.astype(wd), b1p, w2p.astype(wd), b2p, w3p.astype(wd), b3p)


def critic_ref(state, action, params):
    """Pure-JAX f32 reference written in the original PyTorch concat form
    (reconstructs the unaugmented weights), validating both the ±passthrough
    augmentation and the kernel numerics."""
    ad = action.shape[1]
    w1p, b1p, w2p, b2p, w3p, b3p = [p.astype(jnp.float32) for p in params]
    W1, B1 = w1p[:, :400], b1p[0, :400]
    W2h, W2a, B2 = w2p[:400, :300], w2p[400:400 + ad, :300], b2p[0, :300]
    W3, B3 = w3p[0, :300], b3p[0, 0]
    hp = jax.lax.Precision.HIGHEST
    x = jnp.concatenate([state, action], axis=1)
    h1 = jax.nn.relu(jnp.dot(x, W1, precision=hp) + B1)
    h2 = jax.nn.relu(jnp.dot(h1, W2h, precision=hp)
                     + jnp.dot(action, W2a, precision=hp) + B2)
    q = jnp.sum(h2 * W3, axis=-1, keepdims=True) + B3
    return q, q


if __name__ == "__main__":
    key = jax.random.PRNGKey(0)
    k_s, k_a, k_p, k_s2, k_a2 = jax.random.split(key, 5)

    state_dim, action_dim = 8, 4
    params = init_params(k_p, state_dim, action_dim)

    # Small batch: single full-array tile (grid of 1).
    batch = 2
    state = jax.random.normal(k_s, (batch, state_dim), jnp.float32)
    action = jax.random.normal(k_a, (batch, action_dim), jnp.float32)
    q1, q2 = critic_forward(state, action, params)
    jax.block_until_ready((q1, q2))
    r1, r2 = critic_ref(state, action, params)
    assert q1.shape == (batch, 1) and q2.shape == (batch, 1)
    # bf16 activations + bf16 weights (f32 accumulate) vs f32 reference.
    assert jnp.allclose(q1, r1, atol=5e-3, rtol=2e-2)
    assert jnp.allclose(q2, r2, atol=5e-3, rtol=2e-2)

    # Larger batch: 2-tile grid (megacore split + ragged last tile + lane-dense out).
    big = 1000
    state2 = jax.random.normal(k_s2, (big, state_dim), jnp.float32)
    action2 = jax.random.normal(k_a2, (big, action_dim), jnp.float32)
    p1, p2 = critic_forward(state2, action2, params)
    jax.block_until_ready((p1, p2))
    t1, _ = critic_ref(state2, action2, params)
    assert p1.shape == (big, 1)
    assert jnp.allclose(p1, t1, atol=5e-3, rtol=2e-2)

    print("KERNEL_OK")
</pallas_src>

<mosaic_0001>
module attributes {stable_mosaic.version = 11 : i64} {
  func.func @_critic_kernel(%arg0: i32, %arg1: memref<2x12xbf16, #tpu.memory_space<vmem>>, %arg2: memref<12x512xbf16, #tpu.memory_space<vmem>>, %arg3: memref<1x512xf32, #tpu.memory_space<vmem>>, %arg4: memref<512x384xbf16, #tpu.memory_space<vmem>>, %arg5: memref<1x384xf32, #tpu.memory_space<vmem>>, %arg6: memref<1x384xbf16, #tpu.memory_space<vmem>>, %arg7: memref<1x1xf32, #tpu.memory_space<vmem>>, %arg8: memref<1x2xf32, #tpu.memory_space<vmem>>) attributes {dimension_semantics = [#tpu.dimension_semantics<parallel>], iteration_bounds = array<i64: 1>, scalar_prefetch = 0 : i64, scratch_operands = 0 : i64, tpu.core_type = #tpu.core_type<tc>, window_params = [{transform_indices = @transform_0, window_bounds = array<i64: 2, 12>}, {pipeline_mode = #tpu.pipeline_mode<synchronous>, transform_indices = @transform_1, window_bounds = array<i64: 12, 512>}, {pipeline_mode = #tpu.pipeline_mode<synchronous>, transform_indices = @transform_2, window_bounds = array<i64: 1, 512>}, {pipeline_mode = #tpu.pipeline_mode<synchronous>, transform_indices = @transform_3, window_bounds = array<i64: 512, 384>}, {pipeline_mode = #tpu.pipeline_mode<synchronous>, transform_indices = @transform_4, window_bounds = array<i64: 1, 384>}, {pipeline_mode = #tpu.pipeline_mode<synchronous>, transform_indices = @transform_5, window_bounds = array<i64: 1, 384>}, {pipeline_mode = #tpu.pipeline_mode<synchronous>, transform_indices = @transform_6, window_bounds = array<i64: 1, 1>}, {transform_indices = @transform_7, window_bounds = array<i64: 1, 2>}]} {
    %c0 = arith.constant 0 : index
    %c0_0 = arith.constant 0 : index
    %0 = vector.load %arg1[%c0, %c0_0] : memref<2x12xbf16, #tpu.memory_space<vmem>>, vector<2x12xbf16>
    %c0_1 = arith.constant 0 : index
    %c0_2 = arith.constant 0 : index
    %1 = vector.load %arg2[%c0_1, %c0_2] : memref<12x512xbf16, #tpu.memory_space<vmem>>, vector<12x512xbf16>
    %cst = arith.constant dense<0.000000e+00> : vector<2x512xf32>
    %2 = tpu.matmul %0, %1, %cst {dimension_numbers = #tpu.dot_dimension_numbers<[1], [0], [0], [1], [0, 0, 1, 1], [], []>} : vector<2x12xbf16>, vector<12x512xbf16>, vector<2x512xf32> -> vector<2x512xf32>
    %c0_3 = arith.constant 0 : index
    %c0_4 = arith.constant 0 : index
    %3 = vector.load %arg3[%c0_3, %c0_4] : memref<1x512xf32, #tpu.memory_space<vmem>>, vector<1x512xf32>
    %4 = vector.broadcast %3 : vector<1x512xf32> to vector<2x512xf32>
    %5 = arith.addf %2, %4 : vector<2x512xf32>
    %cst_5 = arith.constant 0.000000e+00 : f32
    %6 = vector.broadcast %cst_5 : f32 to vector<2x512xf32>
    %7 = arith.maximumf %5, %6 : vector<2x512xf32>
    %8 = arith.truncf %7 : vector<2x512xf32> to vector<2x512xbf16>
    %c0_6 = arith.constant 0 : index
    %c0_7 = arith.constant 0 : index
    %9 = vector.load %arg4[%c0_6, %c0_7] : memref<512x384xbf16, #tpu.memory_space<vmem>>, vector<512x384xbf16>
    %cst_8 = arith.constant dense<0.000000e+00> : vector<2x384xf32>
    %10 = tpu.matmul %8, %9, %cst_8 {dimension_numbers = #tpu.dot_dimension_numbers<[1], [0], [0], [1], [0, 0, 1, 1], [], []>} : vector<2x512xbf16>, vector<512x384xbf16>, vector<2x384xf32> -> vector<2x384xf32>
    %c0_9 = arith.constant 0 : index
    %c0_10 = arith.constant 0 : index
    %11 = vector.load %arg5[%c0_9, %c0_10] : memref<1x384xf32, #tpu.memory_space<vmem>>, vector<1x384xf32>
    %12 = vector.broadcast %11 : vector<1x384xf32> to vector<2x384xf32>
    %13 = arith.addf %10, %12 : vector<2x384xf32>
    %cst_11 = arith.constant 0.000000e+00 : f32
    %14 = vector.broadcast %cst_11 : f32 to vector<2x384xf32>
    %15 = arith.maximumf %13, %14 : vector<2x384xf32>
    %c0_12 = arith.constant 0 : index
    %c0_13 = arith.constant 0 : index
    %16 = vector.load %arg6[%c0_12, %c0_13] : memref<1x384xbf16, #tpu.memory_space<vmem>>, vector<1x384xbf16>
    %17 = arith.truncf %15 : vector<2x384xf32> to vector<2x384xbf16>
    %cst_14 = arith.constant dense<0.000000e+00> : vector<1x2xf32>
    %18 = tpu.matmul %16, %17, %cst_14 {dimension_numbers = #tpu.dot_dimension_numbers<[1], [1], [0], [0], [0, 0, 1, 0], [], []>} : vector<1x384xbf16>, vector<2x384xbf16>, vector<1x2xf32> -> vector<1x2xf32>
    %c0_15 = arith.constant 0 : index
    %c0_16 = arith.constant 0 : index
    %19 = vector.load %arg7[%c0_15, %c0_16] : memref<1x1xf32, #tpu.memory_space<vmem>>, vector<1x1xf32>
    %20 = vector.broadcast %19 : vector<1x1xf32> to vector<1x2xf32>
    %21 = arith.addf %18, %20 : vector<1x2xf32>
    %c0_17 = arith.constant 0 : index
    %c0_18 = arith.constant 0 : index
    %22 = vector.load %arg8[%c0_17, %c0_18] : memref<1x2xf32, #tpu.memory_space<vmem>>, vector<1x2xf32>
    tpu.vector_store %arg8[%c0_17, %c0_18], %21 {strides = array<i32>} : memref<1x2xf32, #tpu.memory_space<vmem>>, vector<1x2xf32>,
    return
  }
  func.func @transform_0(%arg0: i32) -> (i32, i32) {
    %c0_i32 = arith.constant 0 : i32
    %c0_i32_0 = arith.constant 0 : i32
    return %arg0, %c0_i32 : i32, i32
  }
  func.func @transform_1(%arg0: i32) -> (i32, i32) {
    %c0_i32 = arith.constant 0 : i32
    %c0_i32_0 = arith.constant 0 : i32
    %c0_i32_1 = arith.constant 0 : i32
    return %c0_i32, %c0_i32_0 : i32, i32
  }
  func.func @transform_2(%arg0: i32) -> (i32, i32) {
    %c0_i32 = arith.constant 0 : i32
    %c0_i32_0 = arith.constant 0 : i32
    %c0_i32_1 = arith.constant 0 : i32
    return %c0_i32, %c0_i32_0 : i32, i32
  }
  func.func @transform_3(%arg0: i32) -> (i32, i32) {
    %c0_i32 = arith.constant 0 : i32
    %c0_i32_0 = arith.constant 0 : i32
    %c0_i32_1 = arith.constant 0 : i32
    return %c0_i32, %c0_i32_0 : i32, i32
  }
  func.func @transform_4(%arg0: i32) -> (i32, i32) {
    %c0_i32 = arith.constant 0 : i32
    %c0_i32_0 = arith.constant 0 : i32
    %c0_i32_1 = arith.constant 0 : i32
    return %c0_i32, %c0_i32_0 : i32, i32
  }
  func.func @transform_5(%arg0: i32) -> (i32, i32) {
    %c0_i32 = arith.constant 0 : i32
    %c0_i32_0 = arith.constant 0 : i32
    %c0_i32_1 = arith.constant 0 : i32
    return %c0_i32, %c0_i32_0 : i32, i32
  }
  func.func @transform_6(%arg0: i32) -> (i32, i32) {
    %c0_i32 = arith.constant 0 : i32
    %c0_i32_0 = arith.constant 0 : i32
    %c0_i32_1 = arith.constant 0 : i32
    return %c0_i32, %c0_i32_0 : i32, i32
  }
  func.func @transform_7(%arg0: i32) -> (i32, i32) {
    %c0_i32 = arith.constant 0 : i32
    %c0_i32_0 = arith.constant 0 : i32
    return %arg0, %c0_i32 : i32, i32
  }
}

</mosaic_0001>

<bundles_post_ra>
// kernel: tpu_custom_call.1
= control target key start
LH: loop header
LB: loop body
LE: loop exit
PB: predicated region body
PF: predicated region fallthrough
CT: control target
= control target key end

     0   :  { %s1674_s0 = inlined_call_operand.hbm [shape: bf16[2,12], index: 0, kind: input, shape index: {}]   ;;  %s1675_s1 = inlined_call_operand.hbm [shape: bf16[12,512], index: 1, kind: input, shape index: {}]   ;;  %s1676_s2 = inlined_call_operand.vmem [shape: f32[1,512], index: 2, kind: input, shape index: {}]   ;;  %s1677_s3 = inlined_call_operand.hbm [shape: bf16[512,384], index: 3, kind: input, shape index: {}]   ;;  %s1678_s4 = inlined_call_operand.vmem [shape: f32[1,384], index: 4, kind: input, shape index: {}]   ;;  %s1679_s5 = inlined_call_operand.vmem [shape: bf16[1,384], index: 5, kind: input, shape index: {}]   ;;  %s1680_s6 = inlined_call_operand.<no memory space> [shape: f32[1,1], index: 6, kind: input, shape index: {}]   ;;  %s1681_s7 = inlined_call_operand.hbm [shape: f32[1,2], index: 7, kind: output, shape index: {}]  }
   0x1   :  { %v12_v0 = vstv %s1680_s6 }
   0x2   :  { %13 = vst [vmem:[#allocation2] sm:$0x1] %v12_v0 }
   0x3   :  { %14 = vsyncpa [#allocation4], 0 }
   0x4   :  { %15 = vsyncpa [#allocation7], 0 }
   0x5   :  { %16 = vsyncpa [#allocation5], 0  ;;  %s1570_s26 = smov [#allocation6]  }
   0x6   :  { %s32_s27 = sshll.u32 %s1570_s26, 4  ;;  %s33_s27 = int_to_ptr.vmem [resolvable:$true] %s32_s27 }
   0x7   :  { %s1492_s28 = scalar_lea.vmem %s33_s27, 512  ;;  %p1497_p1 = scmp.lt.s32.totalorder %s33_s27, %s33_s27 }
   0x8   :  { %p1493_p0 = scmp.ne.s32.totalorder %s33_s27, %s1492_s28  ;;  %p1498_p2 = scmp.lt.s32.totalorder %s1492_s28, %s1492_s28 }
   0xa   :  { %p1499_p3 = por %p1498_p2, %p1497_p1 }
   0xc   :  { %p1500_p4 = pnand %p1499_p3, %p1493_p0 }
   0xe   :  { %1503 = shalt.err (!%p1500_p4)
}
   0xf   :  { %s1571_s29 = smov 256   ;;  %s1572_s30 = smov 16  }
  0x10   :  { %38 = dma.hbm_to_vmem [thread:$0]  %s1675_s1, 512, %s33_s27, [#allocation7], %s1571_s29, %s1571_s29, %s1572_s30  }
  0x11   :  { %s1573_s6 = smov [#allocation3]   ;;  %s1574_s11 = smov [#allocation8]  }
  0x12   :  { %s23_s10 = sshll.u32 %s1573_s6, 4  ;;  %s46_s12 = sshll.u32 %s1574_s11, 4  ;;  %s24_s10 = int_to_ptr.vmem [resolvable:$true] %s23_s10  ;;  %s47_s12 = int_to_ptr.vmem [resolvable:$true] %s46_s12 }
  0x13   :  { %s1512_s13 = scalar_lea.vmem %s24_s10, 16  ;;  %s1516_s14 = scalar_lea.vmem %s24_s10, 32 }
  0x14   :  { %p1513_p5 = scmp.ne.s32.totalorder %s24_s10, %s1512_s13  ;;  %p1517_p6 = scmp.lt.s32.totalorder %s24_s10, %s24_s10 }
  0x15   :  { %p1518_p7 = scmp.lt.s32.totalorder %s1516_s14, %s1512_s13 }
  0x17   :  { %p1519_p8 = por %p1518_p7, %p1517_p6 }
  0x19   :  { %p1520_p9 = pnand %p1519_p8, %p1513_p5 }
  0x1b   :  { %1523 = shalt.err (!%p1520_p9)
}
  0x1c   :  { %26 = dma.hbm_to_vmem [thread:$0]  %s1674_s0, 16, %s24_s10, [#allocation4]  }
  0x1d   :  { %s1532_s17 = scalar_lea.vmem %s47_s12, 12288  ;;  %p1537_p11 = scmp.lt.s32.totalorder %s47_s12, %s47_s12 }
  0x1e   :  { %p1533_p10 = scmp.ne.s32.totalorder %s47_s12, %s1532_s17  ;;  %p1538_p12 = scmp.lt.s32.totalorder %s1532_s17, %s1532_s17 }
  0x20   :  { %p1539_p13 = por %p1538_p12, %p1537_p11 }
  0x22   :  { %p1540_p0 = pnand %p1539_p13, %p1533_p10 }
  0x24   :  { %1543 = shalt.err (!%p1540_p0)
}
  0x25   :  { %s1575_s1 = smov 192   ;;  %s1576_s18 = smov 12  }
  0x26   :  { %52 = dma.hbm_to_vmem [thread:$0]  %s1677_s3, 12288, %s47_s12, [#allocation7], %s1575_s1, %s1575_s1, %s1576_s18  }
  0x27   :  { %1564 = dma.done.wait [#allocation4], 16  }
  0x28   :  { %1565 = vsyncadd [#allocation4], 4294967280 }
  0x29   :  { %1566 = dma.done.wait [#allocation7], 12800  }
  0x2a   :  { %1567 = vsyncadd [#allocation7], 4294954496  ;;  %v1577_v1 = vmov 0   ;;  %vm116_vm0 = vcmask 1045504   ;;  %v69_v6 = vld [vmem:[#allocation3] sm:$0x1] }
  0x2b   :  { %161 = vmatprep.mubr.bf16.mxu0 %v1577_v1  ;;  %202 = vmatprep.mubr.bf16.mxu1 %v1577_v1  ;;  %v1350_v2 = vld [vmem:[#allocation6 + $0x4] ss:$16 sps:$4 sm:$0x3f]   ;;  %v1352_v3 = vld [vmem:[#allocation6 + $0xc] ss:$16 sps:$4 sm:$0x3f]  }
  0x2c   :  { %1349 = vset.pattern.permute.xlu0 %v1577_v1  ;;  %1184 = vmatprep.subr.msk.bf16.mxu0 %vm116_vm0, %v1350_v2  ;;  %v1354_v4 = vld [vmem:[#allocation6] ss:$16 sps:$4 sm:$0x3f]   ;;  %v1355_v5 = vld [vmem:[#allocation6 + $0x8] ss:$16 sps:$4 sm:$0x3f]  }
  0x2d   :  { %1186 = vmatprep.subr.msk.bf16.mxu1 %vm116_vm0, %v1352_v3  ;;  %v118_v7 = vsel %vm116_vm0, %v1354_v4, 0  ;;  %v124_v8 = vsel %vm116_vm0, %v1355_v5, 0  ;;  %v1356_v9 = vld [vmem:[#allocation8 + $0xa8] ss:$12 sps:$4 sm:$0xff]   ;;  %v1358_v10 = vld [vmem:[#allocation8 + $0xac] ss:$12 sps:$4 sm:$0xff]  }
  0x2e   :  { %144 = vmatpush1.bf16.msra.mxu0 %v118_v7  ;;  %185 = vmatpush1.bf16.msra.mxu1 %v124_v8  ;;  %vm112_vm1 = vcmask 97280   ;;  %v1359_v11 = vld [vmem:[#allocation8 + $0x228] ss:$12 sps:$4 sm:$0xff]   ;;  %v1361_v12 = vld [vmem:[#allocation8 + $0x22c] ss:$12 sps:$4 sm:$0xff]   ;;  %vm1580_vm2 = vmmov 0  }
  0x2f   :  { %876 = vmatprep.subr.bf16.mxu0 %v1358_v10  ;;  %v1364_v13 = vld [vmem:[#allocation8 + $0x94] ss:$12 sps:$4 sm:$0xff]   ;;  %v1362_v14 = vld [vmem:[#allocation8 + $0x90] ss:$12 sps:$4 sm:$0xff]   ;;  %917 = vmatprep.subr.bf16.mxu1 %v1361_v12  ;;  %v1368_v19 = vld [vmem:[#allocation8 + $0x78] ss:$12 sps:$4 sm:$0xff]  }
  0x30   :  { %v1367_v15 = vld [vmem:[#allocation8 + $0x214] ss:$12 sps:$4 sm:$0xff]   ;;  %v1365_v16 = vld [vmem:[#allocation8 + $0x210] ss:$12 sps:$4 sm:$0xff]   ;;  %v1371_v20 = vld [vmem:[#allocation8 + $0x1f8] ss:$12 sps:$4 sm:$0xff]  }
  0x31   :  { %1185 = vmatmul.mubr.msk.bf16.vlgmr.msra.gmra.mxu0 %vm112_vm1, %v69_v6  ;;  %1187 = vmatmul.mubr.msk.bf16.vlgmr.msra.gmra.mxu1 %vm112_vm1, %v69_v6  ;;  %v1370_v17 = vld [vmem:[#allocation8 + $0x7c] ss:$12 sps:$4 sm:$0xff]   ;;  %v1376_v21 = vld [vmem:[#allocation8 + $0x64] ss:$12 sps:$4 sm:$0xff]   ;;  %v1374_v23 = vld [vmem:[#allocation8 + $0x60] ss:$12 sps:$4 sm:$0xff]  }
  0x32   :  { %877 = vmatpush1.bf16.msra.mxu0 %v1356_v9  ;;  %918 = vmatpush1.bf16.msra.mxu1 %v1359_v11  ;;  %v1373_v18 = vld [vmem:[#allocation8 + $0x1fc] ss:$12 sps:$4 sm:$0xff]   ;;  %v1379_v22 = vld [vmem:[#allocation8 + $0x1e4] ss:$12 sps:$4 sm:$0xff]   ;;  %v1377_v24 = vld [vmem:[#allocation8 + $0x1e0] ss:$12 sps:$4 sm:$0xff]   ;;  %v76_v11 = vlaneseq }
  0x33   :  { %878 = vmatprep.subr.bf16.mxu0 %v1364_v13  ;;  %919 = vmatprep.subr.bf16.mxu1 %v1367_v15  ;;  %v1382_v25 = vld [vmem:[#allocation8 + $0x4c] ss:$12 sps:$4 sm:$0xff]   ;;  %v1380_v27 = vld [vmem:[#allocation8 + $0x48] ss:$12 sps:$4 sm:$0xff]   ;;  %v1386_v31 = vld [vmem:[#allocation8 + $0x30] ss:$12 sps:$4 sm:$0xff]  }
  0x34   :  { %v1385_v26 = vld [vmem:[#allocation8 + $0x1cc] ss:$12 sps:$4 sm:$0xff]   ;;  %v1383_v28 = vld [vmem:[#allocation8 + $0x1c8] ss:$12 sps:$4 sm:$0xff]   ;;  %v1389_v32 = vld [vmem:[#allocation8 + $0x1b0] ss:$12 sps:$4 sm:$0xff]  }
  0x35   :  { %v1388_v29 = vld [vmem:[#allocation8 + $0x34] ss:$12 sps:$4 sm:$0xff]   ;;  %v1394_v33 = vld [vmem:[#allocation8 + $0x1c] ss:$12 sps:$4 sm:$0xff]   ;;  %v1392_v35 = vld [vmem:[#allocation8 + $0x18] ss:$12 sps:$4 sm:$0xff]  }
  0x36   :  { %879 = vmatpush1.bf16.msra.mxu0 %v1362_v14  ;;  %920 = vmatpush1.bf16.msra.mxu1 %v1365_v16  ;;  %v1391_v30 = vld [vmem:[#allocation8 + $0x1b4] ss:$12 sps:$4 sm:$0xff]   ;;  %v1397_v34 = vld [vmem:[#allocation8 + $0x19c] ss:$12 sps:$4 sm:$0xff]   ;;  %v1395_v36 = vld [vmem:[#allocation8 + $0x198] ss:$12 sps:$4 sm:$0xff]  }
  0x37   :  { %880 = vmatprep.subr.bf16.mxu0 %v1370_v17  ;;  %921 = vmatprep.subr.bf16.mxu1 %v1373_v18  ;;  %v1400_v37 = vld [vmem:[#allocation8 + $0x4] ss:$12 sps:$4 sm:$0xff]   ;;  %v1398_v39 = vld [vmem:[#allocation8] ss:$12 sps:$4 sm:$0xff]   ;;  %v1404_v43 = vld [vmem:[#allocation8 + $0x168] ss:$12 sps:$4 sm:$0xff]  }
  0x38   :  { %v1403_v38 = vld [vmem:[#allocation8 + $0x184] ss:$12 sps:$4 sm:$0xff]   ;;  %v1401_v40 = vld [vmem:[#allocation8 + $0x180] ss:$12 sps:$4 sm:$0xff]   ;;  %v1407_v44 = vld [vmem:[#allocation8 + $0x2e8] ss:$12 sps:$4 sm:$0xff]  }
  0x39   :  { %v1406_v41 = vld [vmem:[#allocation8 + $0x16c] ss:$12 sps:$4 sm:$0xff]   ;;  %v1412_v45 = vld [vmem:[#allocation8 + $0x154] ss:$12 sps:$4 sm:$0xff]   ;;  %v1410_v46 = vld [vmem:[#allocation8 + $0x150] ss:$12 sps:$4 sm:$0xff]  }
  0x3a   :  { %881 = vmatpush1.bf16.msra.mxu0 %v1368_v19  ;;  %922 = vmatpush1.bf16.msra.mxu1 %v1371_v20  ;;  %v1409_v42 = vld [vmem:[#allocation8 + $0x2ec] ss:$12 sps:$4 sm:$0xff]   ;;  %v1415_v47 = vld [vmem:[#allocation8 + $0x2d4] ss:$12 sps:$4 sm:$0xff]   ;;  %v1413_v48 = vld [vmem:[#allocation8 + $0x2d0] ss:$12 sps:$4 sm:$0xff]  }
  0x3b   :  { %882 = vmatprep.subr.bf16.mxu0 %v1376_v21  ;;  %923 = vmatprep.subr.bf16.mxu1 %v1379_v22  ;;  %v1418_v49 = vld [vmem:[#allocation8 + $0x13c] ss:$12 sps:$4 sm:$0xff]   ;;  %v1416_v51 = vld [vmem:[#allocation8 + $0x138] ss:$12 sps:$4 sm:$0xff]   ;;  %v1422_v55 = vld [vmem:[#allocation8 + $0x120] ss:$12 sps:$4 sm:$0xff]  }
  0x3c   :  { %v1421_v50 = vld [vmem:[#allocation8 + $0x2bc] ss:$12 sps:$4 sm:$0xff]   ;;  %v1419_v52 = vld [vmem:[#allocation8 + $0x2b8] ss:$12 sps:$4 sm:$0xff]   ;;  %v1425_v56 = vld [vmem:[#allocation8 + $0x2a0] ss:$12 sps:$4 sm:$0xff]  }
  0x3d   :  { %v1424_v53 = vld [vmem:[#allocation8 + $0x124] ss:$12 sps:$4 sm:$0xff]   ;;  %v1430_v57 = vld [vmem:[#allocation8 + $0x10c] ss:$12 sps:$4 sm:$0xff]   ;;  %v1428_v59 = vld [vmem:[#allocation8 + $0x108] ss:$12 sps:$4 sm:$0xff]  }
  0x3e   :  { %883 = vmatpush1.bf16.msra.mxu0 %v1374_v23  ;;  %924 = vmatpush1.bf16.msra.mxu1 %v1377_v24  ;;  %v1427_v54 = vld [vmem:[#allocation8 + $0x2a4] ss:$12 sps:$4 sm:$0xff]   ;;  %v1433_v58 = vld [vmem:[#allocation8 + $0x28c] ss:$12 sps:$4 sm:$0xff]   ;;  %v1431_v60 = vld [vmem:[#allocation8 + $0x288] ss:$12 sps:$4 sm:$0xff]  }
  0x3f   :  { %884 = vmatprep.subr.bf16.mxu0 %v1382_v25  ;;  %925 = vmatprep.subr.bf16.mxu1 %v1385_v26  ;;  %v1436_v61 = vld [vmem:[#allocation8 + $0xf4] ss:$12 sps:$4 sm:$0xff]   ;;  %v1434_v63 = vld [vmem:[#allocation8 + $0xf0] ss:$12 sps:$4 sm:$0xff]   ;;  %v1440_v3 = vld [vmem:[#allocation8 + $0xd8] ss:$12 sps:$4 sm:$0xff]  }
  0x40   :  { %v1439_v62 = vld [vmem:[#allocation8 + $0x274] ss:$12 sps:$4 sm:$0xff]   ;;  %v1437_v0 = vld [vmem:[#allocation8 + $0x270] ss:$12 sps:$4 sm:$0xff]   ;;  %v1443_v4 = vld [vmem:[#allocation8 + $0x258] ss:$12 sps:$4 sm:$0xff]  }
  0x41   :  { %v1442_v1 = vld [vmem:[#allocation8 + $0xdc] ss:$12 sps:$4 sm:$0xff]   ;;  %v1448_v5 = vld [vmem:[#allocation8 + $0xc4] ss:$12 sps:$4 sm:$0xff]   ;;  %v1446_v7 = vld [vmem:[#allocation8 + $0xc0] ss:$12 sps:$4 sm:$0xff]  }
  0x42   :  { %885 = vmatpush1.bf16.msra.mxu0 %v1380_v27  ;;  %926 = vmatpush1.bf16.msra.mxu1 %v1383_v28  ;;  %v1445_v2 = vld [vmem:[#allocation8 + $0x25c] ss:$12 sps:$4 sm:$0xff]   ;;  %v1451_v6 = vld [vmem:[#allocation8 + $0x244] ss:$12 sps:$4 sm:$0xff]   ;;  %v1449_v8 = vld [vmem:[#allocation8 + $0x240] ss:$12 sps:$4 sm:$0xff]  }
  0x43   :  { %886 = vmatprep.subr.bf16.mxu0 %v1388_v29  ;;  %927 = vmatprep.subr.bf16.mxu1 %v1391_v30  ;;  %v1452_v9 = vld [vmem:[#allocation8 + $0x170] ss:$12 sps:$4 sm:$0xff]   ;;  %v1634_v12 = vshrl.u32 %v76_v11, 7  ;;  %vm1162_vm3 = vcmask 8192  }
  0x44   :  { %v1453_v10 = vld [vmem:[#allocation8 + $0x2f0] ss:$12 sps:$4 sm:$0xff]  }
  0x45   :  { %v1637_v13 = vsub.s32 0, %v1634_v12  ;;  %v86_v14 = vsub.s32 2, %v1634_v12  ;;  %v74_v15 = vld [vmem:[%s1676_s2] sm:$0xf]  ;;  %v82_v16 = vsub.s32 1, %v1634_v12  ;;  %v90_v17 = vsub.s32 3, %v1634_v12 }
  0x46   :  { %887 = vmatpush1.bf16.msra.mxu0 %v1386_v31  ;;  %928 = vmatpush1.bf16.msra.mxu1 %v1389_v32  ;;  %v1284_v11 = vld.sshfl [vmem:[%s1679_s5] sm:$0x13 pattern:$0x75316420] }
  0x47   :  { %888 = vmatprep.subr.bf16.mxu0 %v1394_v33  ;;  %929 = vmatprep.subr.bf16.mxu1 %v1397_v34  ;;  %v79_v18 = vrot.slane %v74_v15, %v1637_v13  ;;  %v87_v19 = vrot.slane %v74_v15, %v86_v14  ;;  %v83_v20 = vrot.slane %v74_v15, %v82_v16 }
  0x48   :  { %v91_v21 = vrot.slane %v74_v15, %v90_v17  ;;  %v1063_v15 = vcombine.high %v1284_v11, %v1284_v11 }
  0x4a   :  { %889 = vmatpush1.bf16.msra.mxu0 %v1392_v35  ;;  %930 = vmatpush1.bf16.msra.mxu1 %v1395_v36 }
  0x4b   :  { %890 = vmatprep.subr.bf16.mxu0 %v1400_v37  ;;  %931 = vmatprep.subr.bf16.mxu1 %v1403_v38 }
  0x4e   :  { %891 = vmatpush1.bf16.msra.mxu0 %v1398_v39  ;;  %932 = vmatpush1.bf16.msra.mxu1 %v1401_v40 }
  0x4f   :  { %892 = vmatprep.subr.bf16.mxu0 %v1406_v41  ;;  %933 = vmatprep.subr.bf16.mxu1 %v1409_v42  ;;  %v1454_v41 = vld [vmem:[#allocation8 + $0xb0] ss:$12 sps:$4 sm:$0xff]  }
  0x50   :  { %v1455_v42 = vld [vmem:[#allocation8 + $0x230] ss:$12 sps:$4 sm:$0xff]  }
  0x52   :  { %893 = vmatpush2.bf16.msra.mxu0 %v1404_v43  ;;  %934 = vmatpush2.bf16.msra.mxu1 %v1407_v44  ;;  %v1456_v44 = vld [vmem:[#allocation8 + $0x158] ss:$12 sps:$4 sm:$0xff]  }
  0x53   :  { %894 = vmatprep.subr.bf16.mxu0 %v1412_v45  ;;  %935 = vmatprep.subr.bf16.mxu1 %v1415_v47  ;;  %v1457_v45 = vld [vmem:[#allocation8 + $0x2d8] ss:$12 sps:$4 sm:$0xff]  }
  0x54   :  { %v1459_v47 = vld [vmem:[#allocation8 + $0x218] ss:$12 sps:$4 sm:$0xff]  }
  0x56   :  { %895 = vmatpush2.bf16.msra.mxu0 %v1410_v46  ;;  %936 = vmatpush2.bf16.msra.mxu1 %v1413_v48  ;;  %v1458_v46 = vld [vmem:[#allocation8 + $0x98] ss:$12 sps:$4 sm:$0xff]   ;;  %v1460_v48 = vld [vmem:[#allocation8 + $0x140] ss:$12 sps:$4 sm:$0xff]  }
  0x57   :  { %896 = vmatprep.subr.bf16.mxu0 %v1418_v49  ;;  %937 = vmatprep.subr.bf16.mxu1 %v1421_v50  ;;  %v1461_v49 = vld [vmem:[#allocation8 + $0x2c0] ss:$12 sps:$4 sm:$0xff]  }
  0x58   :  { %v1462_v50 = vld [vmem:[#allocation8 + $0x80] ss:$12 sps:$4 sm:$0xff]  }
  0x5a   :  { %897 = vmatpush2.bf16.msra.mxu0 %v1416_v51  ;;  %938 = vmatpush2.bf16.msra.mxu1 %v1419_v52  ;;  %v1463_v51 = vld [vmem:[#allocation8 + $0x200] ss:$12 sps:$4 sm:$0xff]   ;;  %v1464_v52 = vld [vmem:[#allocation8 + $0x128] ss:$12 sps:$4 sm:$0xff]  }
  0x5b   :  { %898 = vmatprep.subr.bf16.mxu0 %v1424_v53  ;;  %939 = vmatprep.subr.bf16.mxu1 %v1427_v54  ;;  %v1465_v53 = vld [vmem:[#allocation8 + $0x2a8] ss:$12 sps:$4 sm:$0xff]  }
  0x5c   :  { %v1466_v54 = vld [vmem:[#allocation8 + $0x68] ss:$12 sps:$4 sm:$0xff]  }
  0x5e   :  { %899 = vmatpush2.bf16.msra.mxu0 %v1422_v55  ;;  %940 = vmatpush2.bf16.msra.mxu1 %v1425_v56  ;;  %v1467_v55 = vld [vmem:[#allocation8 + $0x1e8] ss:$12 sps:$4 sm:$0xff]   ;;  %v1468_v56 = vld [vmem:[#allocation8 + $0x110] ss:$12 sps:$4 sm:$0xff]  }
  0x5f   :  { %900 = vmatprep.subr.bf16.mxu0 %v1430_v57  ;;  %941 = vmatprep.subr.bf16.mxu1 %v1433_v58  ;;  %v1469_v57 = vld [vmem:[#allocation8 + $0x290] ss:$12 sps:$4 sm:$0xff]  }
  0x60   :  { %v1470_v58 = vld [vmem:[#allocation8 + $0x50] ss:$12 sps:$4 sm:$0xff]  }
  0x62   :  { %901 = vmatpush2.bf16.msra.mxu0 %v1428_v59  ;;  %942 = vmatpush2.bf16.msra.mxu1 %v1431_v60  ;;  %v1471_v59 = vld [vmem:[#allocation8 + $0x1d0] ss:$12 sps:$4 sm:$0xff]   ;;  %v1472_v60 = vld [vmem:[#allocation8 + $0xf8] ss:$12 sps:$4 sm:$0xff]  }
  0x63   :  { %902 = vmatprep.subr.bf16.mxu0 %v1436_v61  ;;  %943 = vmatprep.subr.bf16.mxu1 %v1439_v62  ;;  %v1473_v61 = vld [vmem:[#allocation8 + $0x278] ss:$12 sps:$4 sm:$0xff]  }
  0x64   :  { %v1474_v62 = vld [vmem:[#allocation8 + $0x38] ss:$12 sps:$4 sm:$0xff]  }
  0x66   :  { %903 = vmatpush2.bf16.msra.mxu0 %v1434_v63  ;;  %944 = vmatpush2.bf16.msra.mxu1 %v1437_v0  ;;  %v1475_v63 = vld [vmem:[#allocation8 + $0x1b8] ss:$12 sps:$4 sm:$0xff]   ;;  %v1476_v0 = vld [vmem:[#allocation8 + $0xe0] ss:$12 sps:$4 sm:$0xff]  }
  0x67   :  { %904 = vmatprep.subr.bf16.mxu0 %v1442_v1  ;;  %945 = vmatprep.subr.bf16.mxu1 %v1445_v2  ;;  %v1477_v1 = vld [vmem:[#allocation8 + $0x260] ss:$12 sps:$4 sm:$0xff]  }
  0x68   :  { %v1478_v2 = vld [vmem:[#allocation8 + $0x20] ss:$12 sps:$4 sm:$0xff]  }
  0x6a   :  { %905 = vmatpush2.bf16.msra.mxu0 %v1440_v3  ;;  %946 = vmatpush2.bf16.msra.mxu1 %v1443_v4  ;;  %v1479_v3 = vld [vmem:[#allocation8 + $0x1a0] ss:$12 sps:$4 sm:$0xff]   ;;  %v1480_v4 = vld [vmem:[#allocation8 + $0xc8] ss:$12 sps:$4 sm:$0xff]  }
  0x6b   :  { %906 = vmatprep.subr.bf16.mxu0 %v1448_v5  ;;  %947 = vmatprep.subr.bf16.mxu1 %v1451_v6  ;;  %v1481_v5 = vld [vmem:[#allocation8 + $0x248] ss:$12 sps:$4 sm:$0xff]  }
  0x6c   :  { %v1482_v6 = vld [vmem:[#allocation8 + $0x8] ss:$12 sps:$4 sm:$0xff]  }
  0x6e   :  { %907 = vmatpush2.bf16.msra.mxu0 %v1446_v7  ;;  %948 = vmatpush2.bf16.msra.mxu1 %v1449_v8  ;;  %v1483_v7 = vld [vmem:[#allocation8 + $0x188] ss:$12 sps:$4 sm:$0xff]   ;;  %v1578_v8 = vmov 1966171168  }
  0x6f   :  { %1285 = vmatprep.subr.bf16.mxu0 %v1452_v9  ;;  %1307 = vmatprep.subr.bf16.mxu1 %v1453_v10  ;;  %v1065_v9 = vunpack.c.l.s4 %v1578_v8 }
  0x71   :  { %v1066_v10 = vunpack.c.0.s8 %v1065_v9 }
  0x73   :  { %v1069_v17 = vsub.s32 %v1066_v10, %v1634_v12 }
  0xf1   :  { %v163_v22 = vpop.f32.mrf.mxu0  ;;  %v204_v23 = vpop.f32.mrf.mxu1 }
  0xf2   :  { %v164_v24 = vadd.f32 %v163_v22, %v79_v18  ;;  %v205_v25 = vadd.f32 %v204_v23, %v87_v19  ;;  %v1077_v18 = vrot.slane %v1063_v15, %v1069_v17  ;;  %v1579_v19 = vmov 0.0   ;;  %v347_v22 = vld [vmem:[%s1678_s4] sm:$0x7]  ;;  %s1581_s4 = smov [#allocation9]  }
  0xf3   :  { %v165_v26 = vpop.f32.mrf.mxu0  ;;  %v206_v27 = vpop.f32.mrf.mxu1  ;;  %v352_v23 = vrot.slane %v347_v22, %v1637_v13  ;;  %s1170_s5 = sshll.u32 %s1581_s4, 4  ;;  %s1171_s5 = int_to_ptr.vmem [resolvable:$true] %s1170_s5 }
  0xf4   :  { %v213_v28 = vmax.f32 %v205_v25, 0.0  ;;  %v166_v29 = vadd.f32 %v165_v26, %v83_v20  ;;  %v207_v30 = vadd.f32 %v206_v27, %v91_v21  ;;  %v211_v31 = vmax.f32 %v164_v24, 0.0  ;;  %v1045_v21 = vld [vmem:[#allocation2] sm:$0x1]  ;;  %s1544_s24 = scalar_lea.vmem %s1171_s5, 16  ;;  %s1548_s25 = scalar_lea.vmem %s1171_s5, 32 }
  0xf5   :  { %v167_v32 = vpop.f32.mrf.mxu0  ;;  %v208_v33 = vpop.f32.mrf.mxu1  ;;  %v1070_v20 = vrot.slane %v1284_v11, %v1069_v17  ;;  %1048 = vperm.xlu0 %1349, %v1045_v21   ;;  %v356_v24 = vrot.slane %v347_v22, %v82_v16  ;;  %p1545_p1 = scmp.ne.s32.totalorder %s1171_s5, %s1544_s24  ;;  %p1549_p2 = scmp.lt.s32.totalorder %s1171_s5, %s1171_s5 }
  0xf6   :  { %v212_v34 = vmax.f32 %v166_v29, 0.0  ;;  %v214_v35 = vmax.f32 %v207_v30, 0.0  ;;  %v1650_v36 = vpack.c.bf16 %v213_v28, %v213_v28  ;;  %v1652_v43 = vpack.c.bf16 %v211_v31, %v211_v31  ;;  %p1550_p3 = scmp.lt.s32.totalorder %s1548_s25, %s1544_s24 }
  0xf7   :  { %v168_v37 = vpop.f32.mrf.mxu0  ;;  %v209_v38 = vpop.f32.mrf.mxu1 }
  0xf8   :  { %v216_v39 = vpack.c.bf16 %v212_v34, %v212_v34  ;;  %v218_v40 = vpack.c.bf16 %v214_v35, %v214_v35  ;;  %p1551_p4 = por %p1550_p3, %p1549_p2 }
  0xfa   :  { %908 = vmatprep.mubr.bf16.mxu0 %v216_v39  ;;  %949 = vmatprep.mubr.bf16.mxu1 %v218_v40  ;;  %p1552_p5 = pnand %p1551_p4, %p1545_p1 }
  0xfb   :  { %909 = vmatmul.mubr.bf16.vlgmr.msra.gmra.mxu0 %v1652_v43  ;;  %950 = vmatmul.mubr.bf16.vlgmr.msra.gmra.mxu1 %v1650_v36 }
  0xfc   :  { %1286 = vmatpush3.bf16.msra.mxu0 %v1454_v41  ;;  %1308 = vmatpush3.bf16.msra.mxu1 %v1455_v42  ;;  %v360_v42 = vrot.slane %v347_v22, %v86_v14 }
  0xfd   :  { %990 = vmatprep.mubr.bf16.mxu0 %v216_v39  ;;  %1030 = vmatprep.mubr.bf16.mxu1 %v218_v40 }
  0xfe   :  { %1287 = vmatprep.subr.bf16.mxu0 %v1456_v44  ;;  %1309 = vmatprep.subr.bf16.mxu1 %v1457_v45 }
 0x100   :  { %1288 = vmatpush3.bf16.msra.mxu0 %v1458_v46  ;;  %1310 = vmatpush3.bf16.msra.mxu1 %v1459_v47 }
 0x101   :  { %1289 = vmatprep.subr.bf16.mxu0 %v1460_v48  ;;  %1311 = vmatprep.subr.bf16.mxu1 %v1461_v49 }
 0x104   :  { %1290 = vmatpush3.bf16.msra.mxu0 %v1462_v50  ;;  %1312 = vmatpush3.bf16.msra.mxu1 %v1463_v51 }
 0x105   :  { %1291 = vmatprep.subr.bf16.mxu0 %v1464_v52  ;;  %1313 = vmatprep.subr.bf16.mxu1 %v1465_v53 }
 0x108   :  { %1292 = vmatpush3.bf16.msra.mxu0 %v1466_v54  ;;  %1314 = vmatpush3.bf16.msra.mxu1 %v1467_v55  ;;  %v1078_v55 = vcombine.high %v1070_v20, %v1070_v20 }
 0x109   :  { %1293 = vmatprep.subr.bf16.mxu0 %v1468_v56  ;;  %1315 = vmatprep.subr.bf16.mxu1 %v1469_v57 }
 0x10c   :  { %1294 = vmatpush3.bf16.msra.mxu0 %v1470_v58  ;;  %1316 = vmatpush3.bf16.msra.mxu1 %v1471_v59 }
 0x10d   :  { %1295 = vmatprep.subr.bf16.mxu0 %v1472_v60  ;;  %1317 = vmatprep.subr.bf16.mxu1 %v1473_v61 }
 0x110   :  { %1296 = vmatpush3.bf16.msra.mxu0 %v1474_v62  ;;  %1318 = vmatpush3.bf16.msra.mxu1 %v1475_v63 }
 0x111   :  { %1297 = vmatprep.subr.bf16.mxu0 %v1476_v0  ;;  %1319 = vmatprep.subr.bf16.mxu1 %v1477_v1 }
 0x114   :  { %1298 = vmatpush3.bf16.msra.mxu0 %v1478_v2  ;;  %1320 = vmatpush3.bf16.msra.mxu1 %v1479_v3 }
 0x115   :  { %1299 = vmatprep.subr.bf16.mxu0 %v1480_v4  ;;  %1321 = vmatprep.subr.bf16.mxu1 %v1481_v5 }
 0x118   :  { %1300 = vmatpush3.bf16.msra.mxu0 %v1482_v6  ;;  %1322 = vmatpush3.bf16.msra.mxu1 %v1483_v7 }
 0x119   :  { %1331 = vmatprep.subr.bf16.mxu1 %v1579_v19 }
 0x11b   :  { %991 = vmatmul.mubr.bf16.vlgmr.msra.gmra.mxu0 %v1652_v43  ;;  %1031 = vmatmul.mubr.bf16.vlgmr.msra.gmra.mxu1 %v1650_v36 }
 0x11c   :  { %1114 = vmatprep.mubr.bf16.mxu0 %v1077_v18  ;;  %1333 = vmatprep.mubr.msk.bf16.mxu1 %vm1580_vm2, %v1579_v19 }
 0x170   :  { %v1049_v14 = vpop.permute.xlu0 %1048 }
 0x171   :  { %v1054_v59 = vrot.slane %v1049_v14, %v1637_v13 }
 0x1bb   :  { %v910_v25 = vpop.f32.mrf.mxu0  ;;  %v951_v26 = vpop.f32.mrf.mxu1 }
 0x1bc   :  { %v911_v27 = vadd.f32 %v910_v25, %v352_v23 }
 0x1bd   :  { %v912_v28 = vpop.f32.mrf.mxu0  ;;  %v953_v29 = vpop.f32.mrf.mxu1 }
 0x1be   :  { %v952_v30 = vadd.f32 %v951_v26, %v911_v27  ;;  %v913_v31 = vadd.f32 %v912_v28, %v356_v24 }
 0x1bf   :  { %v914_v32 = vpop.f32.mrf.mxu0  ;;  %v955_v33 = vpop.f32.mrf.mxu1 }
 0x1c0   :  { %v954_v34 = vadd.f32 %v953_v29, %v913_v31  ;;  %v1038_v35 = vmax.f32 %v952_v30, 0.0 }
 0x1c1   :  { %v915_v36 = vpop.f32.mrf.mxu0  ;;  %v956_v37 = vpop.f32.mrf.mxu1 }
 0x1c2   :  { %v1039_v38 = vmax.f32 %v954_v34, 0.0  ;;  %v1042_v40 = vpack.c.bf16 %v1038_v35, %v1038_v35 }
 0x1c4   :  { %v1043_v39 = vpack.c.bf16 %v1039_v38, %v1039_v38 }
 0x1c6   :  { %1096 = vmatprep.subr.bf16.mxu0 %v1043_v39 }
 0x1c7   :  { %1097 = vmatpush1.bf16.xpose.msra.mxu0 %v1042_v40 }
 0x1ce   :  { %1115 = vmatmul.mubr.bf16.vlgmr.msra.gmra.mxu0 %v1070_v20 }
 0x1db   :  { %v1301_v16 = vpop.f32.mrf.mxu0  ;;  %v1323_v41 = vpop.f32.mrf.mxu1 }
 0x1dd   :  { %v1302_v43 = vpop.f32.mrf.mxu0  ;;  %v1324_v44 = vpop.f32.mrf.mxu1 }
 0x1de   :  { %v1303_v45 = vadd.f32 %v1302_v43, %v1301_v16  ;;  %v1325_v49 = vadd.f32 %v1324_v44, %v1323_v41 }
 0x1df   :  { %v1304_v46 = vpop.f32.mrf.mxu0  ;;  %v1326_v47 = vpop.f32.mrf.mxu1 }
 0x1e0   :  { %v993_v48 = vadd.f32 %v1303_v45, %v360_v42 }
 0x1e1   :  { %v1305_v50 = vpop.f32.mrf.mxu0  ;;  %v1327_v51 = vpop.f32.mrf.mxu1 }
 0x1e2   :  { %v1033_v52 = vadd.f32 %v1325_v49, %v993_v48 }
 0x1e4   :  { %v1040_v53 = vmax.f32 %v1033_v52, 0.0 }
 0x1e6   :  { %v1044_v54 = vpack.c.bf16 %v1040_v53, %v1040_v53 }
 0x1e8   :  { %1332 = vmatpush3.bf16.xpose.msra.mxu1 %v1044_v54 }
 0x1ef   :  { %1334 = vmatmul.mubr.bf16.vlgmr.msra.gmra.mxu1 %v1078_v55 }
 0x28e   :  { %v1116_v56 = vpop.f32.mrf.mxu0 }
 0x28f   :  { %v1117_v60 = vadd.f32 %v1116_v56, %v1054_v59 }
 0x290   :  { %v1118_v57 = vpop.f32.mrf.mxu0 }
 0x292   :  { %v1119_v58 = vpop.f32.mrf.mxu0 }
 0x294   :  { %v1120_v12 = vpop.f32.mrf.mxu0 }
 0x2af   :  { %v1156_v61 = vpop.f32.mrf.mxu1 }
 0x2b0   :  { %v1157_v62 = vadd.f32 %v1156_v61, %v1117_v60 }
 0x2b1   :  { %v1335_v63 = vpop.f32.mrf.mxu1 }
 0x2b2   :  { %1163 = vst.msk [vmem:[#allocation9] sm:$0x1] %vm1162_vm3, %v1157_v62 }
 0x2b3   :  { %v1159_v0 = vpop.f32.mrf.mxu1 }
 0x2b4   :  { %1555 = shalt.err (!%p1552_p5)
}
 0x2b5   :  { %1173 = dma.vmem_to_hbm [thread:$0]  %s1171_s5, 16, %s1681_s7, [#allocation5]   ;;  %v1336_v13 = vpop.f32.mrf.mxu1 }
 0x2b6   :  { %1568 = dma.done.wait [#allocation5], 16  }
 0x2b7   :  { %1569 = vsyncadd [#allocation5], 4294967280 }
 0x2b8   :  { %1177 = vsyncpa [#allocation4], 1 }
 0x2b9   :  { %1178 = vsyncpa [#allocation7], 1 }
 0x2ba   :  { %1179 = vsyncpa [#allocation5], 1 }

</bundles_post_ra>
